<compile_context>
chip_gen: v7x
topology: tpu7x:2x2x1
jax: 0.10.0
libtpu: 0.0.40
codegen_flags: <defaults>
</compile_context>

<pallas_src>
import functools

import numpy as np
import jax
import jax.numpy as jnp
from jax import lax
from jax.experimental import pallas as pl
from jax.experimental.pallas import tpu as pltpu


def _round_up(x, m):
    return (x + m - 1) // m * m


# ----------------------------------------------------------------------------
# Generation detection (only used to pick the FC1 N-tiling / grid layout).
# v5e/v6e: 1 TensorCore, 128 MiB VMEM  -> single 512-wide FC1 output block.
# v7x:     2 TensorCores, 64 MiB VMEM  -> 2x 256-wide "parallel" N blocks.
# Unknown kinds fall back to the v7x-safe (TN=256, N-split) configuration.
# ----------------------------------------------------------------------------
def _device_kind():
    try:
        return jax.devices()[0].device_kind.lower()
    except Exception:
        return ""


_KIND = _device_kind()
_SINGLE_CORE = ("v5" in _KIND) or ("v6" in _KIND)

FC1_TK = 12288                          # 61440 / 12288 = 5 K steps (was 15)
FC1_TN = 512 if _SINGLE_CORE else 256   # 512 on 1-TC chips, 256(+N split) on v7x
CO_CHUNK = 8                            # max live conv accumulators per pass


# ----------------------------------------------------------------------------
# pltpu.roll convention probe (run once, outside jit).  We need "shift columns
# left by k" (out[:, j] = in[:, j+k]); this pins the shift sign regardless of
# whether pltpu.roll follows np.roll (shift right) or a left-shift convention.
# ----------------------------------------------------------------------------
_ROLL_IS_NP = True  # overwritten by _detect_roll_convention()


def _roll_probe_kernel(x_ref, o_ref):
    o_ref[...] = pltpu.roll(x_ref[...], 1, 1)


def _detect_roll_convention():
    global _ROLL_IS_NP
    x = jnp.asarray(np.tile(np.arange(128, dtype=np.int32), (8, 1)))
    y = pl.pallas_call(
        _roll_probe_kernel,
        out_shape=jax.ShapeDtypeStruct((8, 128), jnp.int32),
        grid=(1,),
        in_specs=[pl.BlockSpec((8, 128), lambda i: (0, 0))],
        out_specs=pl.BlockSpec((8, 128), lambda i: (0, 0)),
    )(x)
    v = int(y[0, 0])
    if v == 127:        # np.roll semantics: roll(x, 1) shifts right
        _ROLL_IS_NP = True
    elif v == 1:        # left-shift semantics
        _ROLL_IS_NP = False
    else:
        raise RuntimeError(f"unexpected pltpu.roll probe value: {v}")


def _roll_left(v, k, axis):
    """out[..., j, ...] = v[..., (j + k) % n, ...] along `axis`."""
    n = v.shape[axis]
    k = k % n
    if k == 0:
        return v
    return pltpu.roll(v, (n - k) if _ROLL_IS_NP else k, axis)


# ----------------------------------------------------------------------------
# conv 5x5 (stride 1, valid) + bias + ReLU + 2x2 max-pool, fused
#
# One batch element per grid step ("parallel": on v7x each TC takes one image
# at B=2).  Within a 16-conv-row strip, up to CO_CHUNK output-channel
# accumulators are kept as register values; each shifted 5x5 tap operand is
# built once per (cin,ky,kx) with an XLU lane roll and shared across the
# channels of the chunk.  2x2 max-pool = 2x2 neighbourhood max (two rolls +
# max) followed by two exact one-hot selection matmuls (HIGHEST => bit-exact
# pool); the selectors are VMEM-resident via constant index_maps.
# ----------------------------------------------------------------------------
def _conv_relu_pool_kernel(x_ref, w_ref, b_ref, rsel_ref, csel_ref, o_ref, *,
                           cin, cout, ksz, hp, wp, sp, win, n_strips,
                           co_chunk):
    hs = 2 * sp              # conv-output rows per strip
    kk = ksz * ksz
    rsel = rsel_ref[...]     # (sp, hs)  one-hot even rows (loop-invariant)
    csel = csel_ref[...]     # (win, wp) one-hot even cols (loop-invariant)

    def strip_body(s, carry):
        # clamp the last strip so it overlaps instead of running out of range
        rp0 = jnp.minimum(s * sp, hp - sp)     # pooled-row start of this strip
        r0 = 2 * rp0                           # conv-output-row start

        # Process output channels in chunks of <= co_chunk to bound live
        # accumulator vregs (spill guard for conv2, cout=16).  Re-reading the
        # VMEM-resident input rows / redoing the XLU rolls per chunk is cheap
        # relative to the VALU-bound MAC loop.
        for co0 in range(0, cout, co_chunk):
            cos = list(range(co0, min(co0 + co_chunk, cout)))
            accs = {co: jnp.zeros((hs, win), jnp.float32) for co in cos}
            for ci in range(cin):
                for ky in range(ksz):
                    rows = x_ref[0, ci, pl.ds(r0 + ky, hs), :]   # (hs, win)
                    for kx in range(ksz):
                        # shifted[:, j] = x[ci, r0+ky+i, j+kx]; built once and
                        # shared by every channel of the chunk (XLU lane roll).
                        shifted = _roll_left(rows, kx, 1)
                        for co in cos:
                            tap = w_ref[co * cin * kk + ci * kk
                                        + ky * ksz + kx]
                            accs[co] = accs[co] + shifted * tap

            for co in cos:
                y = jnp.maximum(accs[co] + b_ref[co], 0.0)      # bias + ReLU
                m = jnp.maximum(y, _roll_left(y, 1, 1))         # col-pair max
                m = jnp.maximum(m, _roll_left(m, 1, 0))         # row-pair max
                # exact even-row / even-col selection on the MXU
                pr = jnp.dot(rsel, m, preferred_element_type=jnp.float32,
                             precision=lax.Precision.HIGHEST)   # (sp, win)
                pooled = jnp.dot(pr, csel,
                                 preferred_element_type=jnp.float32,
                                 precision=lax.Precision.HIGHEST)  # (sp, wp)
                o_ref[0, co, pl.ds(rp0, sp), :] = pooled
        return carry

    lax.fori_loop(0, n_strips, strip_body, 0)


def conv_relu_pool(x, w, b):
    bsz, cin, hin, win = x.shape
    cout, _, ksz, _ = w.shape
    hout, wout = hin - ksz + 1, win - ksz + 1
    # The selector-based 2x2 pool assumes even conv-output extents (true for
    # this module: 252x252 and 122x122).
    assert hout % 2 == 0 and wout % 2 == 0, "pool selectors assume even extents"
    hp, wp = hout // 2, wout // 2
    sp = 8                         # pooled rows per strip -> 16 conv rows
    hs = 2 * sp
    assert hp >= sp
    # Roll-wrap safety: building the shifted kx taps with a lane roll wraps
    # the left-edge columns into lanes >= win - (ksz-1) = wout.  The col-pair
    # max only mixes column j with j+1 <= wout-1 for selected columns, and
    # csel only selects even columns <= wout-2, so wrapped lanes are never
    # observed.  Revisit if the window/stride ever changes.
    assert 2 * (wp - 1) + 1 <= wout - 1
    n_strips = pl.cdiv(hp, sp)

    # One-hot selection matrices, built host-side and kept VMEM-resident via a
    # constant index_map.
    rsel = np.zeros((sp, hs), np.float32)
    rsel[np.arange(sp), 2 * np.arange(sp)] = 1.0
    csel = np.zeros((win, wp), np.float32)
    csel[2 * np.arange(wp), np.arange(wp)] = 1.0

    kernel = functools.partial(
        _conv_relu_pool_kernel, cin=cin, cout=cout, ksz=ksz,
        hp=hp, wp=wp, sp=sp, win=win, n_strips=n_strips, co_chunk=CO_CHUNK)

    # TODO(synk): if B=1 ever matters on v7x, promote the strip loop to a
    # second "parallel" grid axis so both TensorCores share one image.
    return pl.pallas_call(
        kernel,
        out_shape=jax.ShapeDtypeStruct((bsz, cout, hp, wp), jnp.float32),
        grid=(bsz,),
        in_specs=[
            pl.BlockSpec((1, cin, hin, win), lambda bb: (bb, 0, 0, 0)),
            pl.BlockSpec(memory_space=pltpu.MemorySpace.SMEM),   # flat weights
            pl.BlockSpec(memory_space=pltpu.MemorySpace.SMEM),   # bias
            pl.BlockSpec((sp, hs), lambda bb: (0, 0)),           # row selector
            pl.BlockSpec((win, wp), lambda bb: (0, 0)),          # col selector
        ],
        out_specs=pl.BlockSpec((1, cout, hp, wp), lambda bb: (bb, 0, 0, 0)),
        compiler_params=pltpu.CompilerParams(
            dimension_semantics=("parallel",)),
    )(x, w.reshape(-1), b, jnp.asarray(rsel), jnp.asarray(csel))


# ----------------------------------------------------------------------------
# FC1: y = relu(x @ W + b).  bf16 weights + bf16 activations, f32 accumulate.
# K-tiled (5 steps); N either one 512-wide block (v5e/v6e) or two 256-wide
# "parallel" blocks (v7x).
# ----------------------------------------------------------------------------
def _fc_relu_kernel(x_ref, w_ref, b_ref, o_ref, acc_ref):
    k = pl.program_id(1)

    @pl.when(k == 0)
    def _():
        acc_ref[...] = jnp.zeros_like(acc_ref)

    # bf16 x bf16 MXU matmul with f32 accumulation.  No precision=HIGHEST:
    # that would re-split the bf16 operands and defeat the HBM saving.
    acc_ref[...] += jnp.dot(x_ref[...], w_ref[...],
                            preferred_element_type=jnp.float32)

    @pl.when(k == pl.num_programs(1) - 1)
    def _():
        o_ref[...] = jnp.maximum(acc_ref[...] + b_ref[...], 0.0)


def fc_relu(x, w_p, b_p, n_valid, *, tk=FC1_TK, tn=FC1_TN):
    m, k = x.shape
    kp, np_ = w_p.shape
    assert kp % tk == 0 and np_ % tn == 0, "weights must be pre-padded"
    if k != kp:
        # activation pad is tiny (~0.25 MB); the huge weight pad/cast was
        # hoisted out of the jitted forward (prepare_params).
        x = jnp.pad(x, ((0, 0), (0, kp - k)))
    x = x.astype(w_p.dtype)            # bf16 activations to match bf16 weights
    nblk, nsteps = np_ // tn, kp // tk
    # VMEM: double-buffered bf16 weight tile = 2 x (tk*tn*2B) = 24 MiB at
    # TN=512 (v5e/v6e) / 12 MiB at TN=256 (v7x) -> 40 MiB limit fits every
    # generation, including v7x's 64 MiB physical VMEM.
    out = pl.pallas_call(
        _fc_relu_kernel,
        out_shape=jax.ShapeDtypeStruct((m, np_), jnp.float32),
        grid=(nblk, nsteps),
        in_specs=[
            pl.BlockSpec((m, tk), lambda n, kk: (0, kk)),
            pl.BlockSpec((tk, tn), lambda n, kk: (kk, n)),
            pl.BlockSpec((1, tn), lambda n, kk: (0, n)),
        ],
        out_specs=pl.BlockSpec((m, tn), lambda n, kk: (0, n)),
        scratch_shapes=[pltpu.VMEM((m, tn), jnp.float32)],
        compiler_params=pltpu.CompilerParams(
            dimension_semantics=("parallel", "arbitrary"),
            vmem_limit_bytes=40 * 1024 * 1024),
    )(x, w_p, b_p)
    return out[:, :n_valid]


# ----------------------------------------------------------------------------
# FC2: y = sigmoid(x @ W + b)  (tiny: one grid step, everything resident, f32)
# ----------------------------------------------------------------------------
def _fc_sigmoid_kernel(x_ref, w_ref, b_ref, o_ref):
    y = jnp.dot(x_ref[...], w_ref[...], preferred_element_type=jnp.float32,
                precision=lax.Precision.HIGHEST) + b_ref[...]
    o_ref[...] = 1.0 / (1.0 + jnp.exp(-y))


def fc_sigmoid(x, w, b):
    m, k = x.shape
    _, n = w.shape
    # TODO(synk): on the TN=512 (single N block) path FC2+sigmoid could be
    # fused into the last-K-step epilogue of _fc_relu_kernel to save one
    # launch; kept separate for a single code path across generations.
    return pl.pallas_call(
        _fc_sigmoid_kernel,
        out_shape=jax.ShapeDtypeStruct((m, n), jnp.float32),
        grid=(1,),
        in_specs=[
            pl.BlockSpec((m, k), lambda i: (0, 0)),
            pl.BlockSpec((k, n), lambda i: (0, 0)),
            pl.BlockSpec((1, n), lambda i: (0, 0)),
        ],
        out_specs=pl.BlockSpec((m, n), lambda i: (0, 0)),
    )(x, w, b.reshape(1, n))


# ----------------------------------------------------------------------------
# parameter preparation (done ONCE, outside jit): pad FC1 weight/bias and
# store the weight in bf16 (halves the HBM-bound FC1 weight stream).
# ----------------------------------------------------------------------------
def prepare_params(params):
    wfc1, bfc1 = params["wfc1"], params["bfc1"]
    k, n = wfc1.shape
    kp, np_ = _round_up(k, FC1_TK), _round_up(n, FC1_TN)
    wfc1_p = (jnp.zeros((kp, np_), jnp.bfloat16)
              .at[:k, :n].set(wfc1.astype(jnp.bfloat16)))
    bfc1_p = jnp.zeros((1, np_), jnp.float32).at[0, :n].set(bfc1)
    out = {kname: v for kname, v in params.items()
           if kname not in ("wfc1", "bfc1")}
    out["wfc1_p"] = wfc1_p
    out["bfc1_p"] = bfc1_p
    return out


# ----------------------------------------------------------------------------
# LeNet forward (matches the PyTorch module's forward)
# ----------------------------------------------------------------------------
def lenet_forward(x, p):
    h = conv_relu_pool(x, p["w1"], p["b1"])                 # (B, 6, 126, 126)
    h = conv_relu_pool(h, p["w2"], p["b2"])                 # (B, 16, 61, 61)
    h = h.reshape(h.shape[0], -1)                           # (B, 61*61*16)
    h = fc_relu(h, p["wfc1_p"], p["bfc1_p"],
                n_valid=p["wfc2"].shape[0])                 # (B, 500)
    h = fc_sigmoid(h, p["wfc2"], p["bfc2"])                 # (B, 196)
    return h


# pure-JAX reference (f32 / HIGHEST) for a correctness check
def lenet_reference(x, p):
    def conv_block(h, w, b):
        y = lax.conv_general_dilated(
            h, w, (1, 1), "VALID",
            dimension_numbers=("NCHW", "OIHW", "NCHW"),
            precision=lax.Precision.HIGHEST)
        y = jnp.maximum(y + b[None, :, None, None], 0.0)
        return lax.reduce_window(y, -jnp.inf, lax.max,
                                 (1, 1, 2, 2), (1, 1, 2, 2), "VALID")
    h = conv_block(x, p["w1"], p["b1"])
    h = conv_block(h, p["w2"], p["b2"])
    h = h.reshape(h.shape[0], -1)
    h = jnp.maximum(jnp.dot(h, p["wfc1"], precision=lax.Precision.HIGHEST)
                    + p["bfc1"], 0.0)
    h = jnp.dot(h, p["wfc2"], precision=lax.Precision.HIGHEST) + p["bfc2"]
    return jax.nn.sigmoid(h)


if __name__ == "__main__":
    _detect_roll_convention()   # pin pltpu.roll shift convention before tracing

    key = jax.random.PRNGKey(0)
    kx_, *kp = jax.random.split(key, 9)
    # Input is forced to (B, 3, 256, 256) by the module's fc1 in_features
    # = 61*61*16 (the only spatial size consistent with the hard-coded FC).
    x = jax.random.normal(kx_, (2, 3, 256, 256), jnp.float32)

    # PyTorch Linear weights are (out, in); stored here pre-transposed (in, out).
    params = dict(
        w1=jax.random.normal(kp[0], (6, 3, 5, 5), jnp.float32) * 0.1,
        b1=jax.random.normal(kp[1], (6,), jnp.float32) * 0.1,
        w2=jax.random.normal(kp[2], (16, 6, 5, 5), jnp.float32) * 0.05,
        b2=jax.random.normal(kp[3], (16,), jnp.float32) * 0.05,
        wfc1=jax.random.normal(kp[4], (61 * 61 * 16, 500), jnp.float32) * 0.01,
        bfc1=jax.random.normal(kp[5], (500,), jnp.float32) * 0.01,
        wfc2=jax.random.normal(kp[6], (500, 196), jnp.float32) * 0.05,
        bfc2=jax.random.normal(kp[7], (196,), jnp.float32) * 0.05,
    )
    prepped = prepare_params(params)    # FC1 pad + bf16 cast hoisted out of jit

    fwd = jax.jit(lenet_forward)
    y = jax.block_until_ready(fwd(x, prepped))

    assert y.shape == (2, 196) and y.dtype == jnp.float32
    assert bool(jnp.all(jnp.isfinite(y)))
    assert bool(jnp.all((y >= 0.0) & (y <= 1.0)))   # sigmoid output range

    # correctness check against a pure-JAX f32 reference.  FC1 now uses bf16
    # weights/activations (f32 accumulation), so the tolerance is 5e-3
    # (conv + pooling + FC2 remain f32-exact).
    y_ref = jax.block_until_ready(jax.jit(lenet_reference)(x, params))
    max_err = float(jnp.max(jnp.abs(y - y_ref)))
    assert max_err < 5e-3, f"max abs error vs reference: {max_err}"

    print("KERNEL_OK")
</pallas_src>

<mosaic_0001>
module attributes {stable_mosaic.version = 11 : i64} {
  func.func @_roll_probe_kernel(%arg0: i32, %arg1: memref<8x128xi32, #tpu.memory_space<vmem>>, %arg2: memref<8x128xi32, #tpu.memory_space<vmem>>) attributes {dimension_semantics = [#tpu.dimension_semantics<arbitrary>], iteration_bounds = array<i64: 1>, scalar_prefetch = 0 : i64, scratch_operands = 0 : i64, tpu.core_type = #tpu.core_type<tc>, window_params = [{pipeline_mode = #tpu.pipeline_mode<synchronous>, transform_indices = @transform_0, window_bounds = array<i64: 8, 128>}, {pipeline_mode = #tpu.pipeline_mode<synchronous>, transform_indices = @transform_1, window_bounds = array<i64: 8, 128>}]} {
    %c0 = arith.constant 0 : index
    %c0_0 = arith.constant 0 : index
    %0 = vector.load %arg1[%c0, %c0_0] : memref<8x128xi32, #tpu.memory_space<vmem>>, vector<8x128xi32>
    %c1_i32 = arith.constant 1 : i32
    %1 = tpu.dynamic_rotate %0 by %c1_i32 dim 1 : vector<8x128xi32>, i32 -> vector<8x128xi32>
    %c0_1 = arith.constant 0 : index
    %c0_2 = arith.constant 0 : index
    %2 = vector.load %arg2[%c0_1, %c0_2] : memref<8x128xi32, #tpu.memory_space<vmem>>, vector<8x128xi32>
    tpu.vector_store %arg2[%c0_1, %c0_2], %1 {strides = array<i32>} : memref<8x128xi32, #tpu.memory_space<vmem>>, vector<8x128xi32>,
    return
  }
  func.func @transform_0(%arg0: i32) -> (i32, i32) {
    %c0_i32 = arith.constant 0 : i32
    %c0_i32_0 = arith.constant 0 : i32
    %c0_i32_1 = arith.constant 0 : i32
    return %c0_i32, %c0_i32_0 : i32, i32
  }
  func.func @transform_1(%arg0: i32) -> (i32, i32) {
    %c0_i32 = arith.constant 0 : i32
    %c0_i32_0 = arith.constant 0 : i32
    %c0_i32_1 = arith.constant 0 : i32
    return %c0_i32, %c0_i32_0 : i32, i32
  }
}

</mosaic_0001>

<bundles_post_ra>
// kernel: tpu_custom_call.1
= control target key start
LH: loop header
LB: loop body
LE: loop exit
PB: predicated region body
PF: predicated region fallthrough
CT: control target
= control target key end

     0   :  { %6 = vsyncpa [#allocation3], 0  ;;  %s128_s0 = inlined_call_operand.hbm [shape: s32[8,128], index: 0, kind: input, shape index: {}]   ;;  %s129_s1 = inlined_call_operand.hbm [shape: s32[8,128], index: 1, kind: output, shape index: {}]  }
   0x1   :  { %7 = vsyncpa [#allocation4], 0  ;;  %s91_s6 = smov [#allocation2]   ;;  %s43_s10 = scalar_lea.hbm %s128_s0, 128 }
   0x2   :  { %s14_s7 = sshll.u32 %s91_s6, 4  ;;  %p44_p0 = scmp.ne.s32.totalorder %s128_s0, %s43_s10  ;;  %s15_s7 = int_to_ptr.vmem [resolvable:$true] %s14_s7 }
   0x3   :  { %p47_p1 = scmp.lt.u32.totalorder %s43_s10, %s128_s0 }
   0x5   :  { %p49_p2 = pnand %p47_p1, %p44_p0 }
   0x7   :  { %52 = shalt.err (!%p49_p2)
}
   0x8   :  { %s53_s15 = scalar_lea.vmem %s15_s7, 128  ;;  %p58_p4 = scmp.lt.s32.totalorder %s15_s7, %s15_s7 }
   0x9   :  { %p54_p3 = scmp.ne.s32.totalorder %s15_s7, %s53_s15  ;;  %p59_p5 = scmp.lt.s32.totalorder %s53_s15, %s53_s15 }
   0xb   :  { %p60_p6 = por %p59_p5, %p58_p4 }
   0xd   :  { %p61_p7 = pnand %p60_p6, %p54_p3 }
   0xf   :  { %64 = shalt.err (!%p61_p7)
}
  0x10   :  { %17 = dma.hbm_to_vmem [thread:$0]  %s128_s0, 128, %s15_s7, [#allocation3]  }
  0x11   :  { %87 = dma.done.wait [#allocation3], 128  }
  0x12   :  { %88 = vsyncadd [#allocation3], 4294967168  ;;  %v21_v0 = vld [vmem:[#allocation2] sm:$0xff]  ;;  %s92_s18 = smov 1   ;;  %s93_s19 = smov [#allocation5]  }
  0x13   :  { %22 = vrot.lane.b32.xlu0 %v21_v0, %s92_s18  ;;  %s31_s20 = sshll.u32 %s93_s19, 4  ;;  %s32_s20 = int_to_ptr.vmem [resolvable:$true] %s31_s20 }
  0x14   :  { %s65_s21 = scalar_lea.vmem %s32_s20, 128  ;;  %p70_p9 = scmp.lt.s32.totalorder %s32_s20, %s32_s20 }
  0x15   :  { %p66_p8 = scmp.ne.s32.totalorder %s32_s20, %s65_s21  ;;  %p71_p10 = scmp.lt.s32.totalorder %s65_s21, %s65_s21 }
  0x17   :  { %p72_p11 = por %p71_p10, %p70_p9 }
  0x19   :  { %p73_p12 = pnand %p72_p11, %p66_p8 }
  0x85   :  { %v23_v1 = vpop.permute.xlu0 %22 }
  0x86   :  { %24 = vst [vmem:[#allocation5] sm:$0xff] %v23_v1 }
  0x87   :  { %76 = shalt.err (!%p73_p12)
}
  0x88   :  { %s77_s0 = scalar_lea.hbm %s129_s1, 128 }
  0x89   :  { %p78_p13 = scmp.ne.s32.totalorder %s129_s1, %s77_s0  ;;  %p81_p0 = scmp.lt.u32.totalorder %s77_s0, %s129_s1 }
  0x8b   :  { %p83_p1 = pnand %p81_p0, %p78_p13 }
  0x8d   :  { %86 = shalt.err (!%p83_p1)
}
  0x8e   :  { %34 = dma.vmem_to_hbm [thread:$0]  %s32_s20, 128, %s129_s1, [#allocation4]  }
  0x8f   :  { %89 = dma.done.wait [#allocation4], 128  }
  0x90   :  { %90 = vsyncadd [#allocation4], 4294967168 }
  0x91   :  { %38 = vsyncpa [#allocation3], 1 }
  0x92   :  { %39 = vsyncpa [#allocation4], 1 }

</bundles_post_ra>
